<compile_context>
chip_gen: v7x
topology: tpu7x:2x2x1
jax: 0.10.0
libtpu: 0.0.40
codegen_flags: <defaults>
</compile_context>

<pallas_src>
import math

import numpy as np
import jax
import jax.numpy as jnp
from jax.experimental import pallas as pl
from jax.experimental.pallas import tpu as pltpu


# ----------------------------------------------------------------------------
# host-side helpers (numpy)
# ----------------------------------------------------------------------------
def _round_up(x: int, m: int) -> int:
    return ((x + m - 1) // m) * m


def _pick_h_tile(h_pad: int) -> int:
    """Largest 8-multiple tile (<=128) dividing the 32-divisible padded height."""
    for t in (128, 96, 64, 32):
        if h_pad % t == 0:
            return t
    return h_pad


def _src_coords(out_size: int, in_size: int):
    """PyTorch bilinear source coords (align_corners=False, recompute_scale_factor=True)."""
    scale = in_size / out_size
    dst = np.arange(out_size, dtype=np.float64)
    src = np.maximum((dst + 0.5) * scale - 0.5, 0.0)     # torch clamps negative src to 0
    x0 = np.floor(src).astype(np.int64)
    lam = (src - x0).astype(np.float32)
    x1 = np.minimum(x0 + 1, in_size - 1)
    return x0, x1, lam


def _width_weight_t(w_out: int, w_in: int, w_pad: int, w_in_pad: int) -> np.ndarray:
    """Transposed width interpolation matrix (w_in_pad, w_pad).

    Output columns >= w_out and input rows >= w_in are zero, so both the
    zero-padded input columns and the zero-padded output columns are fused into
    the same matmul (padding costs no extra pass).
    """
    x0, x1, lam = _src_coords(w_out, w_in)
    w = np.zeros((w_pad, w_in_pad), dtype=np.float32)
    rows = np.arange(w_out)
    np.add.at(w, (rows, x0), 1.0 - lam)
    np.add.at(w, (rows, x1), lam)
    return np.ascontiguousarray(w.T)


def _bilinear_reference(img: np.ndarray, h_out: int, w_out: int) -> np.ndarray:
    """Independent gather+lerp bilinear reference (PyTorch semantics), f32 numpy."""
    _, h_in, w_in = img.shape
    y0, y1, ly = _src_coords(h_out, h_in)
    x0, x1, lx = _src_coords(w_out, w_in)
    top = img[:, y0, :] * (1.0 - ly)[None, :, None] + img[:, y1, :] * ly[None, :, None]
    out = top[:, :, x0] * (1.0 - lx)[None, None, :] + top[:, :, x1] * lx[None, None, :]
    return out.astype(np.float32)


# ----------------------------------------------------------------------------
# Pallas kernel
# ----------------------------------------------------------------------------
def _resize_pad_kernel(hout_ref, rstart_ref, img_ref, whb_ref, wwt_ref, out_ref):
    # hout_ref  : (N,)            int32 SMEM  resized height per image (scalar prefetch)
    # rstart_ref: (N*n_htiles,)   int32 SMEM  8-aligned input-row band start per (image, h-tile)
    # img_ref   : (1, C, Hm, Wm)  bf16        zero-padded image (block constant over h -> 1 fetch/image)
    # whb_ref   : (1, 1, TH, KB)  bf16        compact banded height weights for this h-tile
    # wwt_ref   : (1, Wm, W_pad)  bf16        transposed width weights (constant over h -> 1 fetch/image)
    # out_ref   : (1, C, TH, W_pad) bf16
    i = pl.program_id(0)
    j = pl.program_id(1)
    th = out_ref.shape[2]
    kb = whb_ref.shape[3]
    c = img_ref.shape[1]

    tile_is_pad_only = (j * th) >= hout_ref[i]

    @pl.when(tile_is_pad_only)
    def _():
        # the whole h-tile lies below the resized image -> pure zero padding
        out_ref[...] = jnp.zeros_like(out_ref)

    @pl.when(jnp.logical_not(tile_is_pad_only))
    def _():
        start = pl.multiple_of(rstart_ref[i * pl.num_programs(1) + j], 8)
        wh = whb_ref[0, 0]                       # (TH, KB)
        wwt = wwt_ref[0]                         # (Wm, W_pad)
        # C is tiny and unrolled; per-channel keeps the f32 temp at (TH, Wm).
        for ci in range(c):
            band = img_ref[0, ci, pl.ds(start, kb), :]                    # (KB, Wm) bf16
            tmp = jnp.dot(wh, band, preferred_element_type=jnp.float32)   # (TH, Wm) f32
            out_ref[0, ci] = jnp.dot(tmp.astype(jnp.bfloat16), wwt,
                                     preferred_element_type=jnp.float32
                                     ).astype(out_ref.dtype)


# ----------------------------------------------------------------------------
# wrapper: one pallas_call for the whole batch
# ----------------------------------------------------------------------------
def resize_and_pad_batch(images, out_sizes, h_pad, w_pad, out_dtype=jnp.bfloat16):
    """Bilinear-resize a list of CHW images (PyTorch semantics) and zero-pad to NCHW."""
    n = len(images)
    c = int(images[0].shape[0])
    # 128-aligned padded input extents (lane-aligned K dims / unmasked weight loads).
    h_in_max = _round_up(max(int(im.shape[1]) for im in images), 128)
    w_in_max = _round_up(max(int(im.shape[2]) for im in images), 128)

    th = _pick_h_tile(h_pad)
    n_ht = h_pad // th

    # zero-padded bf16 input batch
    imgs = jnp.stack([
        jnp.pad(im.astype(jnp.bfloat16),
                ((0, 0),
                 (0, h_in_max - int(im.shape[1])),
                 (0, w_in_max - int(im.shape[2]))))
        for im in images
    ])                                                                 # (N, C, Hm, Wm)

    # dense transposed width weights, one per image  (TODO(synk): band this K too)
    wwt = np.stack([
        _width_weight_t(wo, int(im.shape[2]), w_pad, w_in_max)
        for im, (_, wo) in zip(images, out_sizes)
    ])                                                                 # (N, Wm, W_pad)

    # ---- banded height weights ------------------------------------------------
    # pass 1: per-(image, h-tile) band extents -> common static band size KB
    metas, max_ext = [], 8
    for im, (ho, _) in zip(images, out_sizes):
        h_in = int(im.shape[1])
        y0, y1, lam = _src_coords(ho, h_in)
        starts, ends = [], []
        for j in range(n_ht):
            r0 = j * th
            if r0 >= ho:                          # pure-padding tile
                starts.append(0); ends.append(0)
                continue
            r1 = min(r0 + th, ho)
            lo = (int(y0[r0]) // 8) * 8           # 8-aligned band start
            hi = int(y1[r1 - 1]) + 1
            starts.append(lo); ends.append(hi)
            max_ext = max(max_ext, hi - lo)
        metas.append((y0, y1, lam, starts, ends, ho))
    kb = min(_round_up(max_ext, 8), h_in_max)

    # pass 2: compact (TH, KB) weight bands + band-start table for SMEM
    whb = np.zeros((n, n_ht, th, kb), dtype=np.float32)
    row_start = np.zeros((n, n_ht), dtype=np.int32)
    for i, (y0, y1, lam, starts, ends, ho) in enumerate(metas):
        for j in range(n_ht):
            if ends[j] <= starts[j]:
                continue                           # kernel skips this tile via pl.when
            s = min(starts[j], h_in_max - kb)      # keep [s, s+KB) inside the padded image
            row_start[i, j] = s
            r0 = j * th
            for r in range(r0, min(r0 + th, ho)):  # rows >= ho keep zero weights -> exact 0 pad
                whb[i, j, r - r0, int(y0[r]) - s] += 1.0 - float(lam[r])
                whb[i, j, r - r0, int(y1[r]) - s] += float(lam[r])

    hout = jnp.asarray([ho for (ho, _) in out_sizes], dtype=jnp.int32)
    rstart = jnp.asarray(row_start.reshape(-1), dtype=jnp.int32)
    whb = jnp.asarray(whb, dtype=jnp.bfloat16)
    wwt = jnp.asarray(wwt, dtype=jnp.bfloat16)

    return pl.pallas_call(
        _resize_pad_kernel,
        out_shape=jax.ShapeDtypeStruct((n, c, h_pad, w_pad), out_dtype),
        grid_spec=pltpu.PrefetchScalarGridSpec(
            num_scalar_prefetch=2,
            grid=(n, n_ht),
            in_specs=[
                # full image: block index constant over h -> fetched once per image
                pl.BlockSpec((1, c, h_in_max, w_in_max),
                             lambda i, j, ho, rs: (i, 0, 0, 0)),
                # compact height-weight band for this (image, h-tile)
                pl.BlockSpec((1, 1, th, kb),
                             lambda i, j, ho, rs: (i, j, 0, 0)),
                # dense width weights: constant over h -> fetched once per image
                pl.BlockSpec((1, w_in_max, w_pad),
                             lambda i, j, ho, rs: (i, 0, 0)),
            ],
            out_specs=pl.BlockSpec((1, c, th, w_pad),
                                   lambda i, j, ho, rs: (i, 0, j, 0)),
        ),
        compiler_params=pltpu.CompilerParams(
            # split megacore work by image, not by h-tile (avoids duplicate img/wwt fetches)
            dimension_semantics=("parallel", "arbitrary"),
            # 48 MiB: leaves headroom on v7x (64 MiB physical); conservative on v5e/v6e
            vmem_limit_bytes=48 * 1024 * 1024,
        ),
    )(hout, rstart, imgs, whb, wwt)


# ----------------------------------------------------------------------------
# module
# ----------------------------------------------------------------------------
class ImageList:
    def __init__(self, tensors, image_sizes):
        self.tensors = tensors
        self.image_sizes = image_sizes


class ResizeAndPadding:
    """JAX/Pallas equivalent of the PyTorch Resize_and_Padding module."""

    def __init__(self, min_size, max_size):
        self.min_size = min_size
        self.max_size = max_size

    def __call__(self, images, targets=None, size_divisible=32):
        out_sizes = []
        ratios = []
        for img in images:
            _, h, w = img.shape
            im_min = float(min(h, w))
            im_max = float(max(h, w))
            sf = self.min_size / im_min
            if im_max * sf > self.max_size:
                sf = self.max_size / im_max
            # recompute_scale_factor=True: output size = floor(in * scale)
            h_out = int(math.floor(h * sf))
            w_out = int(math.floor(w * sf))
            out_sizes.append((h_out, w_out))
            ratios.append((h_out / h, w_out / w))

        max_h = max(s[0] for s in out_sizes)
        max_w = max(s[1] for s in out_sizes)
        stride = float(size_divisible)
        h_pad = int(math.ceil(max_h / stride) * stride)
        w_pad = int(math.ceil(max_w / stride) * stride)

        batched = resize_and_pad_batch(images, out_sizes, h_pad, w_pad)  # NCHW bf16

        new_targets = None
        if targets is not None:
            new_targets = []
            for t, (rh, rw) in zip(targets, ratios):
                t = dict(t)
                # tiny (N,4) elementwise op -> plain jnp, XLA fuses it for free
                ratio = jnp.array([rw, rh, rw, rh], dtype=jnp.float32)
                t["boxes"] = t["boxes"].astype(jnp.float32) * ratio
                new_targets.append(t)

        image_list = ImageList(batched, [(s[0], s[1]) for s in out_sizes])
        return image_list, new_targets


# ----------------------------------------------------------------------------
# self-test
# ----------------------------------------------------------------------------
if __name__ == "__main__":
    key = jax.random.PRNGKey(0)
    k1, k2, k3, k4 = jax.random.split(key, 4)

    # two small CHW images with different aspect ratios (exercises the h-tile
    # skip, the boundary tile with partial pad rows and a non-128 padded width)
    img1 = jax.random.uniform(k1, (3, 48, 72), dtype=jnp.float32)
    img2 = jax.random.uniform(k2, (3, 96, 40), dtype=jnp.float32)
    boxes1 = jax.random.uniform(k3, (8, 4), dtype=jnp.float32) * 40.0
    boxes2 = jax.random.uniform(k4, (8, 4), dtype=jnp.float32) * 40.0
    targets = [{"boxes": boxes1}, {"boxes": boxes2}]

    model = ResizeAndPadding(min_size=64, max_size=256)
    image_list, targets_out = model([img1, img2], targets)

    out = jax.block_until_ready(image_list.tensors)
    for t in targets_out:
        jax.block_until_ready(t["boxes"])

    assert out.shape[0] == 2 and out.shape[1] == 3
    assert out.shape[2] % 32 == 0 and out.shape[3] % 32 == 0
    assert out.dtype == jnp.bfloat16

    out_np = np.asarray(jax.device_get(out.astype(jnp.float32)))
    imgs_np = [np.asarray(jax.device_get(im)) for im in (img1, img2)]
    boxes_np = [np.asarray(jax.device_get(b)) for b in (boxes1, boxes2)]

    for i, (ho, wo) in enumerate(image_list.image_sizes):
        # padded region beyond each image's resized extent must be exactly zero
        assert np.all(out_np[i, :, :, wo:] == 0.0)
        assert np.all(out_np[i, :, ho:, :] == 0.0)
        # resized content vs an independent gather+lerp bilinear reference
        ref = _bilinear_reference(imgs_np[i], ho, wo)
        np.testing.assert_allclose(out_np[i, :, :ho, :wo], ref, atol=3e-2, rtol=0.0)

    # box rescale check
    for i, (im, b) in enumerate(zip((img1, img2), boxes_np)):
        _, h, w = im.shape
        ho, wo = image_list.image_sizes[i]
        expected = b * np.array([wo / w, ho / h, wo / w, ho / h], dtype=np.float32)
        np.testing.assert_allclose(np.asarray(jax.device_get(targets_out[i]["boxes"])),
                                   expected, rtol=1e-5, atol=1e-5)

    print("KERNEL_OK")
</pallas_src>

<mosaic_0001>
module attributes {stable_mosaic.version = 11 : i64} {
  func.func @_resize_pad_kernel(%arg0: i32, %arg1: i32, %arg2: memref<2xi32, #tpu.memory_space<smem>>, %arg3: memref<10xi32, #tpu.memory_space<smem>>, %arg4: memref<1x3x128x128xbf16, #tpu.memory_space<vmem>>, %arg5: memref<1x1x32x32xbf16, #tpu.memory_space<vmem>>, %arg6: memref<1x128x96xbf16, #tpu.memory_space<vmem>>, %arg7: memref<1x3x32x96xbf16, #tpu.memory_space<vmem>>) attributes {dimension_semantics = [#tpu.dimension_semantics<parallel>, #tpu.dimension_semantics<arbitrary>], iteration_bounds = array<i64: 2, 5>, scalar_prefetch = 2 : i64, scratch_operands = 0 : i64, tpu.core_type = #tpu.core_type<tc>, window_params = [{transform_indices = @transform_0, window_bounds = array<i64: 1, 3, 128, 128>}, {transform_indices = @transform_1, window_bounds = array<i64: 1, 1, 32, 32>}, {transform_indices = @transform_2, window_bounds = array<i64: 1, 128, 96>}, {transform_indices = @transform_3, window_bounds = array<i64: 1, 3, 32, 96>}]} {
    %c32_i32 = arith.constant 32 : i32
    %0 = arith.muli %arg1, %c32_i32 : i32
    %1 = arith.index_cast %arg0 : i32 to index
    %2 = memref.load %arg2[%1] : memref<2xi32, #tpu.memory_space<smem>>
    %3 = arith.cmpi sge, %0, %2 : i32
    %4 = arith.extui %3 : i1 to i32
    %c0_i32 = arith.constant 0 : i32
    %5 = arith.cmpi ne, %4, %c0_i32 : i32
    scf.if %5 {
      %cst = arith.constant 0.000000e+00 : bf16
      %9 = vector.broadcast %cst : bf16 to vector<1x3x32x96xbf16>
      %c0 = arith.constant 0 : index
      %c0_1 = arith.constant 0 : index
      %c0_2 = arith.constant 0 : index
      %c0_3 = arith.constant 0 : index
      %10 = vector.load %arg7[%c0, %c0_1, %c0_2, %c0_3] : memref<1x3x32x96xbf16, #tpu.memory_space<vmem>>, vector<1x3x32x96xbf16>
      tpu.vector_store %arg7[%c0, %c0_1, %c0_2, %c0_3], %9 {strides = array<i32>} : memref<1x3x32x96xbf16, #tpu.memory_space<vmem>>, vector<1x3x32x96xbf16>,
    } else {
    }
    %true = arith.constant true
    %6 = arith.xori %3, %true : i1
    %7 = arith.extui %6 : i1 to i32
    %c0_i32_0 = arith.constant 0 : i32
    %8 = arith.cmpi ne, %7, %c0_i32_0 : i32
    scf.if %8 {
      %c5_i32 = arith.constant 5 : i32
      %9 = arith.muli %arg0, %c5_i32 : i32
      %10 = arith.addi %9, %arg1 : i32
      %11 = arith.index_cast %10 : i32 to index
      %12 = memref.load %arg3[%11] : memref<10xi32, #tpu.memory_space<smem>>
      %13 = tpu.assume_multiple %12, 8 : i32
      %c0 = arith.constant 0 : index
      %c0_1 = arith.constant 0 : index
      %c0_2 = arith.constant 0 : index
      %c0_3 = arith.constant 0 : index
      %14 = vector.load %arg5[%c0, %c0_1, %c0_2, %c0_3] : memref<1x1x32x32xbf16, #tpu.memory_space<vmem>>, vector<1x1x32x32xbf16>
      %15 = vector.shape_cast %14 : vector<1x1x32x32xbf16> to vector<32x32xbf16>
      %c0_4 = arith.constant 0 : index
      %c0_5 = arith.constant 0 : index
      %c0_6 = arith.constant 0 : index
      %16 = vector.load %arg6[%c0_4, %c0_5, %c0_6] : memref<1x128x96xbf16, #tpu.memory_space<vmem>>, vector<1x128x96xbf16>
      %17 = vector.shape_cast %16 : vector<1x128x96xbf16> to vector<128x96xbf16>
      %c0_7 = arith.constant 0 : index
      %c0_8 = arith.constant 0 : index
      %18 = arith.index_cast %13 : i32 to index
      %c0_9 = arith.constant 0 : index
      %19 = vector.load %arg4[%c0_7, %c0_8, %18, %c0_9] : memref<1x3x128x128xbf16, #tpu.memory_space<vmem>>, vector<1x1x32x128xbf16>
      %20 = vector.shape_cast %19 : vector<1x1x32x128xbf16> to vector<32x128xbf16>
      %cst = arith.constant dense<0.000000e+00> : vector<32x128xf32>
      %21 = tpu.matmul %15, %20, %cst {dimension_numbers = #tpu.dot_dimension_numbers<[1], [0], [0], [1], [0, 0, 1, 1], [], []>} : vector<32x32xbf16>, vector<32x128xbf16>, vector<32x128xf32> -> vector<32x128xf32>
      %22 = arith.truncf %21 : vector<32x128xf32> to vector<32x128xbf16>
      %cst_10 = arith.constant dense<0.000000e+00> : vector<32x96xf32>
      %23 = tpu.matmul %22, %17, %cst_10 {dimension_numbers = #tpu.dot_dimension_numbers<[1], [0], [0], [1], [0, 0, 1, 1], [], []>} : vector<32x128xbf16>, vector<128x96xbf16>, vector<32x96xf32> -> vector<32x96xf32>
      %24 = arith.truncf %23 : vector<32x96xf32> to vector<32x96xbf16>
      %c0_11 = arith.constant 0 : index
      %c0_12 = arith.constant 0 : index
      %c0_13 = arith.constant 0 : index
      %c0_14 = arith.constant 0 : index
      %25 = vector.load %arg7[%c0_11, %c0_12, %c0_13, %c0_14] : memref<1x3x32x96xbf16, #tpu.memory_space<vmem>>, vector<1x1x32x96xbf16>
      %26 = vector.shape_cast %25 : vector<1x1x32x96xbf16> to vector<32x96xbf16>
      %27 = vector.shape_cast %24 : vector<32x96xbf16> to vector<1x1x32x96xbf16>
      tpu.vector_store %arg7[%c0_11, %c0_12, %c0_13, %c0_14], %27 {strides = array<i32>} : memref<1x3x32x96xbf16, #tpu.memory_space<vmem>>, vector<1x1x32x96xbf16>,
      %c0_15 = arith.constant 0 : index
      %c1 = arith.constant 1 : index
      %28 = arith.index_cast %13 : i32 to index
      %c0_16 = arith.constant 0 : index
      %29 = vector.load %arg4[%c0_15, %c1, %28, %c0_16] : memref<1x3x128x128xbf16, #tpu.memory_space<vmem>>, vector<1x1x32x128xbf16>
      %30 = vector.shape_cast %29 : vector<1x1x32x128xbf16> to vector<32x128xbf16>
      %cst_17 = arith.constant dense<0.000000e+00> : vector<32x128xf32>
      %31 = tpu.matmul %15, %30, %cst_17 {dimension_numbers = #tpu.dot_dimension_numbers<[1], [0], [0], [1], [0, 0, 1, 1], [], []>} : vector<32x32xbf16>, vector<32x128xbf16>, vector<32x128xf32> -> vector<32x128xf32>
      %32 = arith.truncf %31 : vector<32x128xf32> to vector<32x128xbf16>
      %cst_18 = arith.constant dense<0.000000e+00> : vector<32x96xf32>
      %33 = tpu.matmul %32, %17, %cst_18 {dimension_numbers = #tpu.dot_dimension_numbers<[1], [0], [0], [1], [0, 0, 1, 1], [], []>} : vector<32x128xbf16>, vector<128x96xbf16>, vector<32x96xf32> -> vector<32x96xf32>
      %34 = arith.truncf %33 : vector<32x96xf32> to vector<32x96xbf16>
      %c0_19 = arith.constant 0 : index
      %c1_20 = arith.constant 1 : index
      %c0_21 = arith.constant 0 : index
      %c0_22 = arith.constant 0 : index
      %35 = vector.load %arg7[%c0_19, %c1_20, %c0_21, %c0_22] : memref<1x3x32x96xbf16, #tpu.memory_space<vmem>>, vector<1x1x32x96xbf16>
      %36 = vector.shape_cast %35 : vector<1x1x32x96xbf16> to vector<32x96xbf16>
      %37 = vector.shape_cast %34 : vector<32x96xbf16> to vector<1x1x32x96xbf16>
      tpu.vector_store %arg7[%c0_19, %c1_20, %c0_21, %c0_22], %37 {strides = array<i32>} : memref<1x3x32x96xbf16, #tpu.memory_space<vmem>>, vector<1x1x32x96xbf16>,
      %c0_23 = arith.constant 0 : index
      %c2 = arith.constant 2 : index
      %38 = arith.index_cast %13 : i32 to index
      %c0_24 = arith.constant 0 : index
      %39 = vector.load %arg4[%c0_23, %c2, %38, %c0_24] : memref<1x3x128x128xbf16, #tpu.memory_space<vmem>>, vector<1x1x32x128xbf16>
      %40 = vector.shape_cast %39 : vector<1x1x32x128xbf16> to vector<32x128xbf16>
      %cst_25 = arith.constant dense<0.000000e+00> : vector<32x128xf32>
      %41 = tpu.matmul %15, %40, %cst_25 {dimension_numbers = #tpu.dot_dimension_numbers<[1], [0], [0], [1], [0, 0, 1, 1], [], []>} : vector<32x32xbf16>, vector<32x128xbf16>, vector<32x128xf32> -> vector<32x128xf32>
      %42 = arith.truncf %41 : vector<32x128xf32> to vector<32x128xbf16>
      %cst_26 = arith.constant dense<0.000000e+00> : vector<32x96xf32>
      %43 = tpu.matmul %42, %17, %cst_26 {dimension_numbers = #tpu.dot_dimension_numbers<[1], [0], [0], [1], [0, 0, 1, 1], [], []>} : vector<32x128xbf16>, vector<128x96xbf16>, vector<32x96xf32> -> vector<32x96xf32>
      %44 = arith.truncf %43 : vector<32x96xf32> to vector<32x96xbf16>
      %c0_27 = arith.constant 0 : index
      %c2_28 = arith.constant 2 : index
      %c0_29 = arith.constant 0 : index
      %c0_30 = arith.constant 0 : index
      %45 = vector.load %arg7[%c0_27, %c2_28, %c0_29, %c0_30] : memref<1x3x32x96xbf16, #tpu.memory_space<vmem>>, vector<1x1x32x96xbf16>
      %46 = vector.shape_cast %45 : vector<1x1x32x96xbf16> to vector<32x96xbf16>
      %47 = vector.shape_cast %44 : vector<32x96xbf16> to vector<1x1x32x96xbf16>
      tpu.vector_store %arg7[%c0_27, %c2_28, %c0_29, %c0_30], %47 {strides = array<i32>} : memref<1x3x32x96xbf16, #tpu.memory_space<vmem>>, vector<1x1x32x96xbf16>,
    } else {
    }
    return
  }
  func.func @transform_0(%arg0: i32, %arg1: i32, %arg2: memref<2xi32, #tpu.memory_space<smem>>, %arg3: memref<10xi32, #tpu.memory_space<smem>>) -> (i32, i32, i32, i32) {
    %c0_i32 = arith.constant 0 : i32
    %c0_i32_0 = arith.constant 0 : i32
    %c0_i32_1 = arith.constant 0 : i32
    %c0_i32_2 = arith.constant 0 : i32
    return %arg0, %c0_i32, %c0_i32_0, %c0_i32_1 : i32, i32, i32, i32
  }
  func.func @transform_1(%arg0: i32, %arg1: i32, %arg2: memref<2xi32, #tpu.memory_space<smem>>, %arg3: memref<10xi32, #tpu.memory_space<smem>>) -> (i32, i32, i32, i32) {
    %c0_i32 = arith.constant 0 : i32
    %c0_i32_0 = arith.constant 0 : i32
    %c0_i32_1 = arith.constant 0 : i32
    return %arg0, %arg1, %c0_i32, %c0_i32_0 : i32, i32, i32, i32
  }
  func.func @transform_2(%arg0: i32, %arg1: i32, %arg2: memref<2xi32, #tpu.memory_space<smem>>, %arg3: memref<10xi32, #tpu.memory_space<smem>>) -> (i32, i32, i32) {
    %c0_i32 = arith.constant 0 : i32
    %c0_i32_0 = arith.constant 0 : i32
    %c0_i32_1 = arith.constant 0 : i32
    return %arg0, %c0_i32, %c0_i32_0 : i32, i32, i32
  }
  func.func @transform_3(%arg0: i32, %arg1: i32, %arg2: memref<2xi32, #tpu.memory_space<smem>>, %arg3: memref<10xi32, #tpu.memory_space<smem>>) -> (i32, i32, i32, i32) {
    %c0_i32 = arith.constant 0 : i32
    %c0_i32_0 = arith.constant 0 : i32
    %c0_i32_1 = arith.constant 0 : i32
    return %arg0, %c0_i32, %arg1, %c0_i32_0 : i32, i32, i32, i32
  }
}

</mosaic_0001>

<bundles_post_ra>
// kernel: tpu_custom_call.1
= control target key start
LH: loop header
LB: loop body
LE: loop exit
PB: predicated region body
PF: predicated region fallthrough
CT: control target
= control target key end

     0   :  { %s1894_s0 = inlined_call_operand.vmem [shape: s32[2], index: 0, kind: input, shape index: {}]   ;;  %s1895_s2 = inlined_call_operand.hbm [shape: bf16[2,3,128,128], index: 2, kind: input, shape index: {}]   ;;  %s1896_s3 = inlined_call_operand.vmem [shape: bf16[2,5,32,32], index: 3, kind: input, shape index: {}]   ;;  %s1897_s4 = inlined_call_operand.vmem [shape: bf16[2,128,96], index: 4, kind: input, shape index: {}]   ;;  %s1898_s5 = inlined_call_operand.hbm [shape: bf16[2,3,160,96], index: 5, kind: output, shape index: {}]   ;;  %s1899_s1 = inlined_call_operand.vmem [shape: s32[10], index: 1, kind: input, shape index: {}]  }
   0x1   :  { %1907 = sst [smem:[#allocation20_spill]] %s1895_s2  ;;  %s10_s20 = sshll.u32 %s1894_s0, 4  ;;  %s11_s20 = int_to_ptr.vmem [resolvable:$true] %s10_s20 }
   0x2   :  { %s14_s23 = sshll.u32 %s1899_s1, 4  ;;  %s1326_s24 = scalar_lea.vmem %s11_s20, 16  ;;  %s15_s23 = int_to_ptr.vmem [resolvable:$true] %s14_s23 }
   0x3   :  { %p1327_p0 = scmp.ne.s32.totalorder %s11_s20, %s1326_s24  ;;  %p1331_p1 = scmp.lt.s32.totalorder %s11_s20, %s11_s20 }
   0x4   :  { %p1332_p2 = scmp.lt.s32.totalorder %s1326_s24, %s1326_s24 }
   0x6   :  { %p1333_p3 = por %p1332_p2, %p1331_p1 }
   0x8   :  { %p1334_p4 = pnand %p1333_p3, %p1327_p0 }
   0xa   :  { %1337 = shalt.err (!%p1334_p4)  }
   0xb   :  { %s1478_s25 = smov [#allocation3]   ;;  %s1338_s26 = scalar_lea.vmem %s15_s23, 16 }
   0xc   :  { %13 = dma.vmem_to_smem %s11_s20, 16, %s1478_s25, [#allocation2] }
   0xd   :  { %p1339_p5 = scmp.ne.s32.totalorder %s15_s23, %s1338_s26  ;;  %p1343_p6 = scmp.lt.s32.totalorder %s15_s23, %s15_s23 }
   0xe   :  { %p1344_p7 = scmp.lt.s32.totalorder %s1338_s26, %s1338_s26 }
  0x10   :  { %p1345_p8 = por %p1344_p7, %p1343_p6 }
  0x12   :  { %p1346_p9 = pnand %p1345_p8, %p1339_p5 }
  0x14   :  { %1349 = shalt.err (!%p1346_p9)  }
  0x15   :  { %s1479_s0 = smov [#allocation4]  }
  0x16   :  { %17 = dma.vmem_to_smem %s15_s23, 16, %s1479_s0, [#allocation2] }
  0x17   :  { %1424 = dma.done.wait [#allocation2], 32 }
  0x18   :  { %1425 = vsyncadd [#allocation2], 4294967264 }
  0x19   :  { %19 = sfence }
  0x1a   :  { %20 = vsyncpa [#allocation6], 0 }
  0x1b   :  { %22 = vsyncpa [#allocation6 + $0x1], 0 }
  0x1c   :  { %23 = vsyncpa [#allocation7], 0 }
  0x1d   :  { %25 = vsyncpa [#allocation7 + $0x1], 0  ;;  %s1526_s1 = smov 0   ;;  %s1528_s27 = smov 0  }
  0x1e   :  { %s1530_s28 = smov 0   ;;  %s1532_s29 = smov 0  }
  0x1f   :  { %s1534_s30 = smov 0   ;;  %s1536_s6 = smov 0  }
  0x20   :  { %s1538_s7 = smov 0   ;;  %s1540_s8 = smov 0  }
  0x21   :  { %s1542_s9 = smov 0   ;;  %s1544_s10 = smov 0  }
  0x22   :  { %s1546_s11 = smov 0  }
  0x23 LB: > { %1908 = sst [smem:[#allocation14_spill]] %s1456_s6  ;;  %s976_s12 = sadd.s32 4294967295, %s1476_s11   ;;  %s1476_s11 = sphi %s1546_s11, %s31_s11   ;;  %s1472_s10 = sphi %s1544_s10, %s1930_s10   ;;  %s1468_s9 = sphi %s1542_s9, %s1929_s9   ;;  %s1464_s8 = sphi %s1540_s8, %s1928_s8   ;;  %s1460_s7 = sphi %s1538_s7, %s1927_s7   ;;  %s1456_s6 = sphi %s1536_s6, %s1926_s6   ;;  %s1452_s30 = sphi %s1534_s30, %s1935_s30   ;;  %s1448_s29 = sphi %s1532_s29, %s1934_s29   ;;  %s1444_s28 = sphi %s1530_s28, %s1933_s28   ;;  %s1440_s27 = sphi %s1528_s27, %s1932_s27   ;;  %s1436_s1 = sphi %s1526_s1, %s1931_s1  }
  0x24   : > { %1909 = sst [smem:[#allocation15_spill]] %s1468_s9  ;;  %s977_s13 = sadd.s32 4294967294, %s1476_s11  }
  0x25   : > { %1910 = sst [smem:[#allocation16_spill]] %s1472_s10  ;;  %s40_s14 = sadd.s32 1, %s1468_s9 }
  0x26   : > { %s43_s15 = sadd.s32 1, %s1472_s10  ;;  %p41_p10 = scmp.ge.s32.totalorder %s40_s14, 5 }
  0x27   : > { %s50_s16 = sadd.s32 1, %s1456_s6  ;;  %p57_p11 = scmp.ne.s32.totalorder %s1456_s6, %s1452_s30 }
  0x28   : > { %p58_p12 = scmp.eq.s32.totalorder %s1476_s11, 0  ;;  %s1937_s14 = smov (%p41_p10, %s40_s14), 0 }
  0x29   : > { %1911 = sst [smem:[#allocation17_spill]] %s1937_s14  ;;  %s1939_s15 = smov (!%p41_p10, %s43_s15), %s1472_s10 }
  0x2a   : > { %p1590_p13 = por %p58_p12, %p57_p11  ;;  %p63_p0 = scmp.ne.s32.totalorder %s1452_s30, %s1448_s29 }
  0x2b   : > { %p45_p1 = scmp.ge.s32.totalorder %s1939_s15, 2  ;;  %p64_p2 = scmp.eq.s32.totalorder %s976_s12, 0 }
  0x2c   : > { %s128_s18 = ssub.s32 %s1468_s9, %s1937_s14  ;;  %s132_s19 = sadd.s32 1, %s1444_s28 }
  0x2d   : > { %s1941_s15 = smov (%p45_p1, %s1939_s15), 0  ;;  %p1600_p3 = por %p64_p2, %p63_p0 }
  0x2e   : > { %1913 = sst [smem:[#allocation18_spill]] %s1941_s15  ;;  %p142_p4 = scmp.ne.s32.totalorder %s1444_s28, %s1440_s27 }
  0x2f   : > { %s47_s21 = ssub.s32 %s1472_s10, %s1941_s15  ;;  %p143_p5 = scmp.eq.s32.totalorder %s976_s12, 9 }
  0x30   : > { %p48_p6 = scmp.eq.s32.totalorder %s47_s21, 0  ;;  %s129_s22 = sor.u32 %s128_s18, %s47_s21 }
  0x31   : > { %p130_p7 = scmp.eq.s32.totalorder %s129_s22, 0  ;;  %p1608_p8 = por %p143_p5, %p142_p4 }
  0x32   : > { %s1613_s24 = scalar_select %p48_p6, %s1456_s6, %s50_s16  }
  0x33   : > { %s1915_s23 = scalar_select %p1608_p8, 1, 0 }
  0x34   : > { %1916 = sst [smem:[#allocation19_spill]] %s1613_s24  ;;  %p148_p9 = scmp.ne.s32.totalorder %s1440_s27, %s1436_s1 }
  0x35   : > { %s1616_s25 = scalar_select %p130_p7, %s1444_s28, %s132_s19  }
  0x36   : > { %p149_p10 = scmp.eq.s32.totalorder %s977_s13, 9  ;;  %p1209_p11 = scmp.lt.s32.totalorder %s1476_s11, 10 }
  0x37   : > { %s169_s0 = sand.u32 1, %s1456_s6   ;;  %s1186_s12 = smul.u32 3072, %s1472_s10 }
  0x38   : > { %p1621_p12 = por %p149_p10, %p148_p9  ;;  %s1185_s29 = smul.u32 192, %s169_s0 }
  0x39   : > { %p1629_p0 = pnand %p1209_p11, %p1590_p13  ;;  %s1919_s2 = sld [smem:[#allocation20_spill]] }
  0x3a   : > { %s1917_s26 = scalar_select %p1621_p12, 1, 0 }
  0x3b   : > { %s173_s13 = scalar_lea.vmem [#allocation5], %s1185_s29  ;;  %s1641_s17 = scalar_lea.sflag [#allocation6], %s169_s0 }
  0x3c   : > { %s180_s22 = sshll.u32 %s173_s13, 4  ;;  %p1352_p2 = pneg %p1629_p0  ;;  %s1638_s22 = int_to_ptr.vmem [resolvable:$true] %s180_s22 }
  0x3f   : > { %s1636_s19 = scalar_lea.hbm %s1919_s2, %s1186_s12  ;;  %s1355_s16 = scalar_lea.hbm %s1919_s2, 6144 }
  0x40   : > { %s1350_s15 = scalar_lea.hbm %s1636_s19, 3072  ;;  %p1356_p6 = scmp.lt.u32.totalorder %s1636_s19, %s1919_s2 }
  0x41   : > { %p1351_p13 = scmp.ne.s32.totalorder %s1636_s19, %s1350_s15  ;;  %p1357_p7 = scmp.lt.u32.totalorder %s1355_s16, %s1350_s15 }
  0x42   : > { %p1359_p10 = scmp.lt.u32.totalorder %s1350_s15, %s1636_s19 }
  0x43   : > { %p1353_p4 = pnand %p1352_p2, %p1351_p13  ;;  %p1358_p9 = por %p1357_p7, %p1356_p6 }
  0x45   : > { %p1354_p5 = pneg %p1353_p4  ;;  %p1360_p11 = por %p1359_p10, %p1358_p9 }
  0x47   : > { %p1361_p1 = pnand %p1360_p11, %p1354_p5 }
  0x49   : > { %1364 = shalt.err (!%p1361_p1)
}
  0x4a   : > { %s1365_s0 = scalar_lea.vmem %s1638_s22, 3072  ;;  %s1480_s13 = smov [#allocation5]  }
  0x4b   : > { %p1366_p13 = scmp.ne.s32.totalorder %s1638_s22, %s1365_s0  ;;  %s1370_s12 = sshll.u32 %s1480_s13, 4  ;;  %s1371_s12 = int_to_ptr.vmem [resolvable:$false] %s1370_s12 }
  0x4c   : > { %s1372_s14 = scalar_lea.vmem %s1371_s12, 6144  ;;  %p1373_p8 = scmp.lt.s32.totalorder %s1638_s22, %s1371_s12 }
  0x4d   : > { %p1368_p4 = pnand %p1366_p13, %p1352_p2  ;;  %p1374_p6 = scmp.lt.s32.totalorder %s1372_s14, %s1365_s0 }
  0x4f   : > { %p1369_p12 = pneg %p1368_p4  ;;  %p1375_p7 = por %p1374_p6, %p1373_p8 }
  0x51   : > { %p1376_p9 = pnand %p1375_p7, %p1369_p12 }
  0x53   : > { %1379 = shalt.err (!%p1376_p9)
}
  0x54   : > { %s1481_s15 = smov 64   ;;  %s1482_s21 = smov 4  }
  0x55   : > { %1204 = dma.hbm_to_vmem [thread:$0]  (!%p1629_p0), %s1636_s19, 3072, %s1638_s22, %s1641_s17, %s1481_s15, %s1481_s15, %s1482_s21  }
  0x56   : > { %p208_p1 = scmp.lt.s32.totalorder %s1476_s11, 11  ;;  %p1920_p2 = scmp.ge.s32.totalorder %s1476_s11, 1 }
  0x58   : > { %p209_p5 = pnand %p1920_p2, %p208_p1 }
  0x59   : > { %s214_s16 = sand.u32 (!%p209_p5), 1, %s1452_s30  }
  0x5a   : > { %212 = sbr.rel (%p209_p5) target bundleno = 819 (0x333), region = 32  ;;  %s215_s0 = scalar_lea.sflag (!%p209_p5), [#allocation6], %s214_s16 }
  0x5b   : > { %s1673_s29 = smul.u32 (!%p209_p5), 192, %s214_s16 }
  0x61   : > { %1427 = dma.done.wait (%p1600_p3), %s215_s0, 3072  }
  0x62   : > { %1429 = vsyncadd (%p1600_p3), %s215_s0, 4294964224  ;;  %s1906_s18 = sand.u32 1, %s1440_s27   ;;  %p255_p8 = scmp.lt.s32.totalorder %s1464_s8, 1 }
  0x63   : > { %s1683_s19 = sld [smem:[#allocation3 + %s1464_s8]]  ;;  %s1188_s22 = smul.u32 48, %s1906_s18 }
  0x64   : > { %s256_s17 = scalar_select %p255_p8, %s1464_s8, 1 }
  0x65   : > { %p257_p12 = scmp.lt.s32.totalorder %s1460_s7, 4  ;;  %s986_s0 = sshll.u32 %s1460_s7, 5 }
  0x66   : > { %s1189_s12 = smul.u32 20, %s256_s17  ;;  %s1046_s14 = sshll.u32 %s256_s17, 6 }
  0x67   : > { %s258_s20 = scalar_select %p257_p12, %s1460_s7, 4 }
  0x68   : > { %s1693_s16 = scalar_lea.vmem %s1897_s4, %s1046_s14  ;;  %s1701_s18 = scalar_lea.vmem [#allocation8], %s1188_s22 }
  0x69   : > { %s982_s13 = sshll.u32 %s258_s20, 2  ;;  %p987_p3 = scmp.lt.s32.totalorder %s986_s0, %s1683_s19 }
  0x6a   : > { %s261_s2 = sadd.s32 %s1189_s12, %s982_s13  ;;  %vm277_vm0 = vcmask (!%p987_p3), 781312   ;;  %v1483_v0 = vmov (!%p987_p3), 0  }
  0x6b   : > { %s983_s10 = sshll.u32 %s261_s2, 2  ;;  %276 = sbr.rel (%p987_p3) target bundleno = 114 (0x72), region = 40  ;;  %278 = vst.msk [vmem:[%s1701_s18] sm:$0xf] (!%p987_p3), %vm277_vm0, %v1483_v0  ;;  %279 = vst.msk [vmem:[%s1701_s18 + $0x4] sm:$0xf] (!%p987_p3), %vm277_vm0, %v1483_v0 }
  0x6c   : > { %s1699_s6 = scalar_lea.vmem %s1896_s3, %s983_s10  ;;  %280 = vst.msk [vmem:[%s1701_s18 + $0x8] sm:$0xf] (!%p987_p3), %vm277_vm0, %v1483_v0  ;;  %281 = vst.msk [vmem:[%s1701_s18 + $0xc] sm:$0xf] (!%p987_p3), %vm277_vm0, %v1483_v0 }
  0x6d   : > { %282 = vst.msk [vmem:[%s1701_s18 + $0x10] sm:$0xf] (!%p987_p3), %vm277_vm0, %v1483_v0  ;;  %283 = vst.msk [vmem:[%s1701_s18 + $0x14] sm:$0xf] (!%p987_p3), %vm277_vm0, %v1483_v0 }
  0x6e   : > { %284 = vst.msk [vmem:[%s1701_s18 + $0x18] sm:$0xf] (!%p987_p3), %vm277_vm0, %v1483_v0  ;;  %285 = vst.msk [vmem:[%s1701_s18 + $0x1c] sm:$0xf] (!%p987_p3), %vm277_vm0, %v1483_v0 }
  0x6f   : > { %286 = vst.msk [vmem:[%s1701_s18 + $0x20] sm:$0xf] (!%p987_p3), %vm277_vm0, %v1483_v0  ;;  %287 = vst.msk [vmem:[%s1701_s18 + $0x24] sm:$0xf] (!%p987_p3), %vm277_vm0, %v1483_v0 }
  0x70   : > { %288 = vst.msk [vmem:[%s1701_s18 + $0x28] sm:$0xf] (!%p987_p3), %vm277_vm0, %v1483_v0  ;;  %289 = vst.msk [vmem:[%s1701_s18 + $0x2c] sm:$0xf] (!%p987_p3), %vm277_vm0, %v1483_v0 }
  0x72 PF: > { %p988_p0 = scmp.ge.s32.totalorder %s986_s0, %s1683_s19 }
  0x73   : > { %s294_s2 = smul.u32 (!%p988_p0), 5, %s1464_s8  ;;  %v1719_v1 = vld [vmem:[%s1699_s6] sm:$0xff] (!%p988_p0)   ;;  %vm347_vm1 = vcmask (!%p988_p0), 261120   ;;  %v1728_v3 = vld [vmem:[%s1693_s16 + $0x8] sm:$0xff] (!%p988_p0)   ;;  %v1734_v4 = vld [vmem:[%s1693_s16 + $0x10] sm:$0xff] (!%p988_p0)   ;;  %s1921_s19 = scalar_lea.vmem (!%p988_p0), [#allocation5], %s1673_s29 }
  0x74   : > { %293 = sbr.rel (%p988_p0) target bundleno = 806 (0x326), region = 44  ;;  %1105 = vmatprep.mubr.msk.bf16.mxu0 (!%p988_p0), %vm347_vm1, %v1719_v1  ;;  %v1725_v2 = vld [vmem:[%s1693_s16] sm:$0xff] (!%p988_p0)   ;;  %v1739_v5 = vld [vmem:[%s1693_s16 + $0x18] sm:$0xff] (!%p988_p0)   ;;  %v1755_v10 = vld [vmem:[%s1699_s6 + $0x8] sm:$0xff] (!%p988_p0)   ;;  %vm518_vm2 = vcmask (!%p988_p0), 781312  }
  0x75   : > { %s295_s9 = sadd.s32 (!%p988_p0), %s1460_s7, %s294_s2  ;;  %1109 = vmatprep.subr.bf16.mxu1 (!%p988_p0), %v1725_v2  ;;  %v1750_v8 = vld [vmem:[%s1693_s16 + $0x20] sm:$0xff] (!%p988_p0)   ;;  %v1759_v11 = vld [vmem:[%s1693_s16 + $0x28] sm:$0xff] (!%p988_p0)   ;;  %v1767_v13 = vld [vmem:[%s1693_s16 + $0x30] sm:$0xff] (!%p988_p0)  }
  0x76   : > { %s296_s10 = sld [smem:[#allocation4 + %s295_s9]] (!%p988_p0)  ;;  %1110 = vmatpush3.bf16.msra.mxu1 (!%p988_p0), %v1725_v2  ;;  %v1323_v14 = vld [vmem:[%s1693_s16 + $0x38] sm:$0xff] (!%p988_p0)  }
  0x77   : > { %1111 = vmatprep.subr.bf16.mxu1 (!%p988_p0), %v1728_v3 }
  0x7a   : > { %1112 = vmatpush3.bf16.msra.mxu1 (!%p988_p0), %v1728_v3 }
  0x7b   : > { %1113 = vmatprep.subr.bf16.mxu1 %v1734_v4 }
  0x7c   : > { %s317_s24 = sshra.s32 %s296_s10, 3 }
  0x7d   : > { %s989_s13 = sshll.u32 %s317_s24, 2 }
  0x7e   : > { %s1743_s22 = scalar_lea.vmem %s1921_s19, %s989_s13 [#allocation5]  ;;  %1114 = vmatpush3.bf16.msra.mxu1 %v1734_v4 }
  0x7f   : > { %v1310_v6 = vld [vmem:[%s1743_s22] sm:$0xff]   ;;  %v1311_v7 = vld [vmem:[%s1743_s22 + $0x8] sm:$0xff]   ;;  %1115 = vmatprep.subr.bf16.mxu1 %v1739_v5 }
  0x80   : > { %1101 = vmatprep.subr.bf16.mxu0 %v1310_v6  ;;  %v1314_v9 = vld [vmem:[%s1743_s22 + $0x40] sm:$0xff]   ;;  %v1315_v12 = vld [vmem:[%s1743_s22 + $0x48] sm:$0xff]  }
  0x81   : > { %1102 = vmatpush3.bf16.msra.mxu0 %v1310_v6  ;;  %v1324_v15 = vld [vmem:[%s1743_s22 + $0x80] sm:$0xff]   ;;  %v1325_v28 = vld [vmem:[%s1743_s22 + $0x88] sm:$0xff]  }
  0x82   : > { %1103 = vmatprep.subr.bf16.mxu0 %v1311_v7  ;;  %1116 = vmatpush3.bf16.msra.mxu1 %v1739_v5 }
  0x83   : > { %1117 = vmatprep.subr.bf16.mxu1 %v1750_v8 }
  0x85   : > { %1104 = vmatpush3.bf16.msra.mxu0 %v1311_v7 }
  0x86   : > { %1129 = vmatprep.subr.bf16.mxu0 %v1314_v9  ;;  %1118 = vmatpush3.bf16.msra.mxu1 %v1750_v8 }
  0x87   : > { %1119 = vmatprep.subr.bf16.mxu1 %v1759_v11 }
  0x88   : > { %1106 = vmatmul.mubr.msk.bf16.vlgmr.msra.gmra.mrb[0].mxu0 %vm347_vm1, %v1755_v10 }
  0x89   : > { %1130 = vmatpush3.bf16.msra.mxu0 %v1314_v9  ;;  %1133 = vmatprep.mubr.msk.bf16.mxu0 %vm347_vm1, %v1719_v1 }
  0x8a   : > { %1131 = vmatprep.subr.bf16.mxu0 %v1315_v12  ;;  %1120 = vmatpush3.bf16.msra.mxu1 %v1759_v11 }
  0x8b   : > { %1121 = vmatprep.subr.bf16.mxu1 %v1767_v13 }
  0x8d   : > { %1132 = vmatpush3.bf16.msra.mxu0 %v1315_v12 }
  0x8e   : > { %1137 = vmatprep.subr.bf16.mxu0 %v1725_v2  ;;  %1122 = vmatpush3.bf16.msra.mxu1 %v1767_v13 }
  0x8f   : > { %1123 = vmatprep.subr.bf16.mxu1 %v1323_v14 }
  0x90   : > { %1134 = vmatmul.mubr.msk.bf16.vlgmr.msra.gmra.mrb[4].mxu0 %vm347_vm1, %v1755_v10 }
  0x91   : > { %1138 = vmatpush3.bf16.msra.mxu0 %v1725_v2 }
  0x92   : > { %1139 = vmatprep.subr.bf16.mxu0 %v1728_v3  ;;  %1124 = vmatpush3.bf16.msra.mxu1 %v1323_v14 }
  0x93   : > { %1165 = vmatprep.subr.bf16.mxu1 %v1725_v2 }
  0x95   : > { %1140 = vmatpush3.bf16.msra.mxu0 %v1728_v3 }
  0x96   : > { %1141 = vmatprep.subr.bf16.mxu0 %v1734_v4 }
  0x99   : > { %1142 = vmatpush3.bf16.msra.mxu0 %v1734_v4 }
  0x9a   : > { %1143 = vmatprep.subr.bf16.mxu0 %v1739_v5 }
  0x9d   : > { %1144 = vmatpush3.bf16.msra.mxu0 %v1739_v5 }
  0x9e   : > { %1145 = vmatprep.subr.bf16.mxu0 %v1750_v8 }
  0xa1   : > { %1146 = vmatpush3.bf16.msra.mxu0 %v1750_v8 }
  0xa2   : > { %1147 = vmatprep.subr.bf16.mxu0 %v1759_v11 }
  0xa5   : > { %1148 = vmatpush3.bf16.msra.mxu0 %v1759_v11 }
  0xa6   : > { %1149 = vmatprep.subr.bf16.mxu0 %v1767_v13 }
  0xa9   : > { %1150 = vmatpush3.bf16.msra.mxu0 %v1767_v13 }
  0xaa   : > { %1151 = vmatprep.subr.bf16.mxu0 %v1323_v14 }
  0xad   : > { %1152 = vmatpush3.bf16.msra.mxu0 %v1323_v14 }
  0xae   : > { %1157 = vmatprep.subr.bf16.mxu0 %v1324_v15 }
 0x15b   : > { %v1107_v16 = vpop.f32.mrb[0].mxu0 }
 0x15c   : > { %v388_v17 = vpop.f32.mrb[1].mxu0 }
 0x15d   : > { %v1108_v18 = vpop.f32.mrb[2].mxu0 }
 0x15e   : > { %v404_v19 = vpack.c.bf16 %v1108_v18, %v1107_v16  ;;  %v391_v20 = vpop.f32.mrb[3].mxu0 }
 0x15f   : > { %v403_v21 = vpack.c.bf16 %v391_v20, %v388_v17 }
 0x161   : > { %1125 = vmatprep.mubr.bf16.mxu1 %v403_v21 }
 0x162   : > { %1126 = vmatmul.mubr.bf16.vlgmr.msra.gmra.mrb[0].mxu1 %v404_v19 }
 0x163   : > { %v1135_v22 = vpop.f32.mrb[4].mxu0  ;;  %1166 = vmatpush3.bf16.msra.mxu1 %v1725_v2 }
 0x164   : > { %v576_v23 = vpop.f32.mrb[5].mxu0  ;;  %1167 = vmatprep.subr.bf16.mxu1 %v1728_v3 }
 0x165   : > { %v1136_v24 = vpop.f32.mrb[6].mxu0 }
 0x166   : > { %v592_v25 = vpack.c.bf16 %v1136_v24, %v1135_v22  ;;  %v579_v26 = vpop.f32.mrb[7].mxu0 }
 0x167   : > { %v591_v27 = vpack.c.bf16 %v579_v26, %v576_v23  ;;  %1168 = vmatpush3.bf16.msra.mxu1 %v1728_v3 }
 0x168   : > { %1169 = vmatprep.subr.bf16.mxu1 %v1734_v4 }
 0x169   : > { %1153 = vmatprep.mubr.bf16.mxu0 %v591_v27 }
 0x16a   : > { %1154 = vmatmul.mubr.bf16.vlgmr.msra.gmra.mrb[8].mxu0 %v592_v25 }
 0x16b   : > { %1158 = vmatpush3.bf16.msra.mxu0 %v1324_v15  ;;  %1161 = vmatprep.mubr.msk.bf16.mxu0 %vm347_vm1, %v1719_v1 }
 0x16c   : > { %1159 = vmatprep.subr.bf16.mxu0 %v1325_v28  ;;  %1170 = vmatpush3.bf16.msra.mxu1 %v1734_v4 }
 0x16d   : > { %1171 = vmatprep.subr.bf16.mxu1 %v1739_v5 }
 0x16f   : > { %1160 = vmatpush3.bf16.msra.mxu0 %v1325_v28 }
 0x170   : > { %1172 = vmatpush3.bf16.msra.mxu1 %v1739_v5 }
 0x171   : > { %1173 = vmatprep.subr.bf16.mxu1 %v1750_v8 }
 0x172   : > { %1162 = vmatmul.mubr.msk.bf16.vlgmr.msra.gmra.mrb[12].mxu0 %vm347_vm1, %v1755_v10 }
 0x174   : > { %1174 = vmatpush3.bf16.msra.mxu1 %v1750_v8 }
 0x175   : > { %1175 = vmatprep.subr.bf16.mxu1 %v1759_v11 }
 0x178   : > { %1176 = vmatpush3.bf16.msra.mxu1 %v1759_v11 }
 0x179   : > { %1177 = vmatprep.subr.bf16.mxu1 %v1767_v13 }
 0x17c   : > { %1178 = vmatpush3.bf16.msra.mxu1 %v1767_v13 }
 0x17d   : > { %1179 = vmatprep.subr.bf16.mxu1 %v1323_v14 }
 0x180   : > { %1180 = vmatpush3.bf16.msra.mxu1 %v1323_v14 }
 0x235   : > { %v1127_v29 = vpop.f32.mrb[0].mxu1 }
 0x236   : > { %v1049_v30 = vpack.c.bf16 %v1127_v29, %v1127_v29  ;;  %v487_v31 = vpop.f32.mrb[1].mxu1 }
 0x237   : > { %v1047_v32 = vpack.c.bf16 %v487_v31, %v487_v31  ;;  %v1128_v33 = vpop.f32.mrb[2].mxu1 }
 0x238   : > { %521 = vst.msk [vmem:[%s1701_s18 + $0x8] sm:$0xf] %vm518_vm2, %v1049_v30  ;;  %v1050_v34 = vpack.c.bf16 %v1128_v33, %v1128_v33  ;;  %v490_v35 = vpop.f32.mrb[3].mxu1 }
 0x239   : > { %519 = vst.msk [vmem:[%s1701_s18] sm:$0xf] %vm518_vm2, %v1047_v32  ;;  %v1048_v36 = vpack.c.bf16 %v490_v35, %v490_v35 }
 0x23a   : > { %522 = vst.msk [vmem:[%s1701_s18 + $0xc] sm:$0xf] %vm518_vm2, %v1050_v34 }
 0x23b   : > { %520 = vst.msk [vmem:[%s1701_s18 + $0x4] sm:$0xf] %vm518_vm2, %v1048_v36 }
 0x23d   : > { %v1155_v37 = vpop.f32.mrb[8].mxu0 }
 0x23e   : > { %v1053_v38 = vpack.c.bf16 %v1155_v37, %v1155_v37  ;;  %v627_v39 = vpop.f32.mrb[9].mxu0 }
 0x23f   : > { %v1051_v40 = vpack.c.bf16 %v627_v39, %v627_v39  ;;  %v1156_v41 = vpop.f32.mrb[10].mxu0 }
 0x240   : > { %1023 = vst.msk [vmem:[%s1701_s18 + $0x18] sm:$0xf] %vm518_vm2, %v1053_v38  ;;  %v1054_v42 = vpack.c.bf16 %v1156_v41, %v1156_v41  ;;  %v630_v43 = vpop.f32.mrb[11].mxu0 }
 0x241   : > { %1021 = vst.msk [vmem:[%s1701_s18 + $0x10] sm:$0xf] %vm518_vm2, %v1051_v40  ;;  %v1052_v44 = vpack.c.bf16 %v630_v43, %v630_v43 }
 0x242   : > { %1024 = vst.msk [vmem:[%s1701_s18 + $0x1c] sm:$0xf] %vm518_vm2, %v1054_v42 }
 0x243   : > { %1022 = vst.msk [vmem:[%s1701_s18 + $0x14] sm:$0xf] %vm518_vm2, %v1052_v44 }
 0x245   : > { %v1163_v45 = vpop.f32.mrb[12].mxu0 }
 0x246   : > { %v716_v46 = vpop.f32.mrb[13].mxu0 }
 0x247   : > { %v1164_v47 = vpop.f32.mrb[14].mxu0 }
 0x248   : > { %v732_v48 = vpack.c.bf16 %v1164_v47, %v1163_v45  ;;  %v719_v49 = vpop.f32.mrb[15].mxu0 }
 0x249   : > { %v731_v50 = vpack.c.bf16 %v719_v49, %v716_v46 }
 0x24b   : > { %1181 = vmatprep.mubr.bf16.mxu1 %v731_v50 }
 0x24c   : > { %1182 = vmatmul.mubr.bf16.vlgmr.msra.gmra.mrb[4].mxu1 %v732_v48 }
 0x31f   : > { %v1183_v51 = vpop.f32.mrb[4].mxu1 }
 0x320   : > { %v1057_v52 = vpack.c.bf16 %v1183_v51, %v1183_v51  ;;  %v767_v53 = vpop.f32.mrb[5].mxu1 }
 0x321   : > { %v1055_v54 = vpack.c.bf16 %v767_v53, %v767_v53  ;;  %v1184_v55 = vpop.f32.mrb[6].mxu1 }
 0x322   : > { %1040 = vst.msk [vmem:[%s1701_s18 + $0x28] sm:$0xf] %vm518_vm2, %v1057_v52  ;;  %v1058_v56 = vpack.c.bf16 %v1184_v55, %v1184_v55  ;;  %v770_v57 = vpop.f32.mrb[7].mxu1 }
 0x323   : > { %1038 = vst.msk [vmem:[%s1701_s18 + $0x20] sm:$0xf] %vm518_vm2, %v1055_v54  ;;  %v1056_v58 = vpack.c.bf16 %v770_v57, %v770_v57 }
 0x324   : > { %1041 = vst.msk [vmem:[%s1701_s18 + $0x2c] sm:$0xf] %vm518_vm2, %v1058_v56 }
 0x325   : > { %1039 = vst.msk [vmem:[%s1701_s18 + $0x24] sm:$0xf] %vm518_vm2, %v1056_v58 }
 0x326 PF: > { %s1922_s6 = sand.u32 1, %s1440_s27  }
 0x327   : > { %s804_s29 = scalar_lea.sflag [#allocation7], %s1922_s6 }
 0x328   : > { %s1042_s17 = sshll.u32 %s1460_s7, 2  ;;  %s1190_s12 = smul.u32 60, %s1464_s8 }
 0x329   : > { %s835_s14 = sshll.u32 %s1701_s18, 4  ;;  %s1484_s21 = smov 256   ;;  %s836_s14 = int_to_ptr.vmem [resolvable:$true] %s835_s14 }
 0x32a   : > { %s816_s20 = sadd.s32 %s1190_s12, %s1042_s17  ;;  %p1923_p10 = scmp.ne.s32.totalorder %s1915_s23, 0 }
 0x32b   : > { %s1043_s15 = sshll.u32 %s816_s20, 6  ;;  %s1485_s9 = smov 1280  }
 0x32c   : > { %1193 = sst [smem:[#allocation10]] (%p1923_p10), %s1484_s21  ;;  %s818_s2 = scalar_lea.hbm %s1898_s5, %s1043_s15 }
 0x32d   : > { %1194 = sst [smem:[#allocation10 + $0x1]] (%p1923_p10), %s1485_s9  ;;  %s1486_s10 = smov 4  }
 0x32e   : > { %1195 = sst [smem:[#allocation10 + $0x2]] (%p1923_p10), %s1486_s10  ;;  %s1487_s7 = smov 64  }
 0x32f   : > { %1196 = sst [smem:[#allocation10 + $0x3]] (%p1923_p10), %s1487_s7  ;;  %s1488_s8 = smov [#allocation9]  }
 0x330   : > { %1197 = sst [smem:[#allocation10 + $0x4]] (%p1923_p10), %s1487_s7  ;;  %s1489_s18 = smov 0  }
 0x331   : > { %1198 = sst [smem:[#allocation10 + $0x5]] (%p1923_p10), %s1486_s10 }
 0x332   : > { %1199 = dma.general (%p1923_p10), %s836_s14, 768, %s818_s2, %s804_s29, %s1488_s8, [#allocation10], %s1489_s18, 0  }
 0x333 PF: > { %p1210_p11 = scmp.ge.s32.totalorder %s1476_s11, 2  ;;  %s863_s24 = sand.u32 1, %s1436_s1  }
 0x334   : > { %p1924_p13 = scmp.ne.s32.totalorder %s1917_s26, 0  ;;  %s864_s13 = scalar_lea.sflag [#allocation7], %s863_s24 }
 0x336   : > { %p1206_p4 = pnand %p1210_p11, %p1924_p13 }
 0x338   : > { %1431 = dma.done.wait (!%p1206_p4), %s864_s13, 768  }
 0x339   : > { %1433 = vsyncadd (!%p1206_p4), %s864_s13, 4294966528  ;;  %s31_s11 = sadd.s32 1, %s1476_s11   ;;  %s1925_s23 = sld [smem:[#allocation14_spill]] }
 0x33a   : > { %p28_p6 = scmp.ge.s32.totalorder %s31_s11, 12   ;;  %s1926_s6 = sld [smem:[#allocation19_spill]] }
 0x33b   : > { %s1927_s7 = sld [smem:[#allocation15_spill]]  ;;  %s1928_s8 = sld [smem:[#allocation16_spill]] }
 0x33c   : > { %s1929_s9 = sld [smem:[#allocation17_spill]]  ;;  %s1930_s10 = sld [smem:[#allocation18_spill]] }
 0x33d   : > { %s1931_s1 = smov %s1440_s27  ;;  %s1932_s27 = smov %s1444_s28 }
 0x33e   : > { %s1933_s28 = smov %s1616_s25  ;;  %s1934_s29 = smov %s1452_s30 }
 0x33f   : > { %s1935_s30 = smov %s1925_s23  ;;  %30 = sbr.rel (!%p28_p6) target bundleno = 35 (0x23), region = 101 }
 0x346   :  { %869 = vsyncpa [#allocation6], 1 }
 0x347   :  { %871 = vsyncpa [#allocation6 + $0x1], 1 }
 0x348   :  { %872 = vsyncpa [#allocation7], 1 }
 0x349   :  { %874 = vsyncpa [#allocation7 + $0x1], 1 }

</bundles_post_ra>
